<compile_context>
chip_gen: v7x
topology: tpu7x:2x2x1
jax: 0.10.0
libtpu: 0.0.40
codegen_flags: <defaults>
</compile_context>

<pallas_src>
import math
import jax
import jax.numpy as jnp
import numpy as np
from jax.experimental import pallas as pl
from jax.experimental.pallas import tpu as pltpu

# ---------------- config (mirrors HetAttn args) ----------------
NUM_NODES = 8
DIM_FEATURES = 32
DIM_HIDDENS = 32
DIM_EMBS = 32
DIM_QUERY = 16
ETYPES = ("rel_a", "rel_b")
NUM_ETYPES = len(ETYPES)
CONV_DEPTH = 2
OUT_LANES = 128          # lane-dense output slab: [y | attn | zero pad]

D1 = DIM_EMBS            # convs[1] output width
D0 = DIM_HIDDENS         # convs[0] output width


# ---------------- packed weight-slab layout ----------------

def _slab_layout():
    rows = (
        ("wft",  DIM_FEATURES),                           # feature_trans
        ("ws01", NUM_ETYPES * DIM_HIDDENS + DIM_HIDDENS), # fused conv+loop W, [L1 | L0]
        ("ws1",  NUM_ETYPES * DIM_HIDDENS + DIM_HIDDENS), # fused conv+loop W, L1 only
        ("aw01", NUM_ETYPES * (D1 + D0)),                 # attn Linear1, block-diag 4 groups
        ("aw1",  NUM_ETYPES * D1),                        # attn Linear1, L1 only
        ("a201", 2 * NUM_ETYPES * DIM_QUERY),             # score reduce (w2 fold), combined
        ("a21",  NUM_ETYPES * DIM_QUERY),                 # score reduce, 2nd pass
        ("wcat", (CONV_DEPTH + 1) * DIM_EMBS),            # concat_weight padded to 128 lanes
        ("asel", 8),                                      # attn -> lanes [De:De+E] selector
        ("bias", 8),                                      # rows: b01 | ab01 | b1 | ab1
    )
    layout, off = {}, 0
    for name, r in rows:
        layout[name] = (off, r)
        off += r
    return layout, off


# ---------------- fused Pallas kernel ----------------

def _make_fused_kernel(layout):
    Ne, Dh, Df, Qd, De = NUM_ETYPES, DIM_HIDDENS, DIM_FEATURES, DIM_QUERY, DIM_EMBS
    boff = layout["bias"][0]

    def kernel(adj_ref, x_ref, w_ref, out_ref):
        # adj_ref : (E, N, N) raw adjacency A[e, dst, src]
        # x_ref   : (N, Dfeat)
        # w_ref   : (624, 128) packed weight slab (see _slab_layout)
        # out_ref : (N, 128)   [:, :De] = y, [:, De:De+E] = attn

        def wslab(name, nrows, ncols):
            off = layout[name][0]
            return w_ref[off:off + nrows, 0:ncols]        # static VMEM slice

        wft  = wslab("wft",  Df, Dh)                      # (Df, Dh)
        ws01 = wslab("ws01", Ne * Dh + Dh, Ne * (D1 + D0))  # (96, 128)
        ws1  = wslab("ws1",  Ne * Dh + Dh, Ne * D1)       # (96, 64)
        aw01 = wslab("aw01", Ne * (D1 + D0), 2 * Ne * Qd) # (128, 64)
        aw1  = wslab("aw1",  Ne * D1, Ne * Qd)            # (64, 32)
        a201 = wslab("a201", 2 * Ne * Qd, 8)              # (64, 8), cols [0:4] live
        a21  = wslab("a21",  Ne * Qd, 8)                  # (32, 8), cols [0:2] live
        wcat = wslab("wcat", (CONV_DEPTH + 1) * De, OUT_LANES)   # (96, 128)
        asel = wslab("asel", Ne, OUT_LANES)               # (2, 128)
        b01  = w_ref[boff + 0:boff + 1, 0:Ne * (D1 + D0)] # (1, 128)
        ab01 = w_ref[boff + 1:boff + 2, 0:2 * Ne * Qd]    # (1, 64)
        b1c  = w_ref[boff + 2:boff + 3, 0:Ne * D1]        # (1, 64)
        ab1  = w_ref[boff + 3:boff + 4, 0:Ne * Qd]        # (1, 32)

        # 'right' norm: per-dst 1/clamp(indeg,1), computed once, reused by both passes
        adj = [adj_ref[e] for e in range(Ne)]
        invd = [1.0 / jnp.maximum(jnp.sum(a, axis=1, keepdims=True), 1.0) for a in adj]

        def agg_cat(h):
            # [A_hat[0]@h | A_hat[1]@h | h] -> input of the fused conv+loop matmul
            parts = [jnp.dot(adj[e], h, preferred_element_type=jnp.float32) * invd[e]
                     for e in range(Ne)]
            return jnp.concatenate(parts + [h], axis=-1)  # (N, Ne*Dh + Dh)

        def two_way_softmax(s_a, s_b):
            # exact softmax over 2 edge types: a = sigmoid(s_a - s_b)
            a = 1.0 / (1.0 + jnp.exp(s_b - s_a))
            return a, 1.0 - a

        # h0 = tanh(feature_trans(x))
        h0 = jnp.tanh(jnp.dot(x_ref[...], wft, preferred_element_type=jnp.float32))

        # ---- combined pass: convs[1](g, h0) and convs[0](g, h0) in one sweep
        dst01 = jnp.dot(agg_cat(h0), ws01,
                        preferred_element_type=jnp.float32) + b01          # (N, 128)
        t01 = jnp.tanh(jnp.dot(dst01, aw01,
                               preferred_element_type=jnp.float32) + ab01) # (N, 64)
        s01 = jnp.dot(t01, a201, preferred_element_type=jnp.float32)       # (N, 8)
        a1_0, a1_1 = two_way_softmax(s01[:, 0:1], s01[:, 1:2])             # layer-1 attn
        a0_0, a0_1 = two_way_softmax(s01[:, 2:3], s01[:, 3:4])             # layer-0 attn
        h1   = a1_0 * dst01[:, 0:D1] + a1_1 * dst01[:, D1:2 * D1]
        hmid = (a0_0 * dst01[:, 2 * D1:2 * D1 + D0]
                + a0_1 * dst01[:, 2 * D1 + D0:2 * D1 + 2 * D0])

        # ---- second pass: convs[1](g, hmid); its attention is the one returned
        dst2 = jnp.dot(agg_cat(hmid), ws1,
                       preferred_element_type=jnp.float32) + b1c           # (N, 64)
        t2 = jnp.tanh(jnp.dot(dst2, aw1,
                              preferred_element_type=jnp.float32) + ab1)   # (N, 32)
        s2 = jnp.dot(t2, a21, preferred_element_type=jnp.float32)          # (N, 8)
        at0, at1 = two_way_softmax(s2[:, 0:1], s2[:, 1:2])
        h2 = at0 * dst2[:, 0:D1] + at1 * dst2[:, D1:2 * D1]
        attn = jnp.concatenate([at0, at1], axis=-1)                        # (N, 2)

        # y slab: hc @ padded concat_weight (+ attn placed via tiny selector)
        hc = jnp.concatenate([h0, h1, h2], axis=-1)                        # (N, 96)
        out_ref[...] = (jnp.dot(hc, wcat, preferred_element_type=jnp.float32)
                        + jnp.dot(attn, asel, preferred_element_type=jnp.float32))

    return kernel


# ---------------- wrapper: weight packing + single pallas_call ----------------

def _block_diag(blocks):
    rows = sum(b.shape[0] for b in blocks)
    cols = sum(b.shape[1] for b in blocks)
    out = jnp.zeros((rows, cols), blocks[0].dtype)
    r = c = 0
    for b in blocks:
        out = out.at[r:r + b.shape[0], c:c + b.shape[1]].set(b)
        r += b.shape[0]
        c += b.shape[1]
    return out


def _pack_params(params):
    """Batch all per-etype/per-layer parameters into ONE (624, 128) f32 slab."""
    p0, p1 = params["convs"][0], params["convs"][1]
    Ne, Qd = NUM_ETYPES, DIM_QUERY

    def stack_layer(p):
        # [ block_diag(GraphConv W per etype) ; concat(loop W per etype) ]
        w_bd = _block_diag([p["w"][e] for e in range(Ne)])
        wloop = jnp.concatenate([p["wloop"][e] for e in range(Ne)], axis=-1)
        return jnp.concatenate([w_bd, wloop], axis=0)      # (E*Dh + Dh, E*Dout)

    ws1, ws0 = stack_layer(p1), stack_layer(p0)
    ws01 = jnp.concatenate([ws1, ws0], axis=-1)            # (96, 128)

    b1c = jnp.concatenate([p1["b"][e] for e in range(Ne)], axis=-1)   # (1, 64)
    b0c = jnp.concatenate([p0["b"][e] for e in range(Ne)], axis=-1)
    b01 = jnp.concatenate([b1c, b0c], axis=-1)              # (1, 128)

    aw1 = _block_diag([p1["attn_w1"][e] for e in range(Ne)])          # (64, 32)
    aw0 = _block_diag([p0["attn_w1"][e] for e in range(Ne)])
    aw01 = _block_diag([aw1, aw0])                                     # (128, 64)
    ab1 = jnp.concatenate([p1["attn_b1"][e] for e in range(Ne)], axis=-1)   # (1, 32)
    ab0 = jnp.concatenate([p0["attn_b1"][e] for e in range(Ne)], axis=-1)
    ab01 = jnp.concatenate([ab1, ab0], axis=-1)                        # (1, 64)

    def score_mat(w2s):
        # folds attention[etype][2].weight and the per-group sum into one matmul
        g = len(w2s)
        m = jnp.zeros((g * Qd, g), jnp.float32)
        for i, w2 in enumerate(w2s):
            m = m.at[i * Qd:(i + 1) * Qd, i].set(w2.reshape(-1))
        return m

    a21 = score_mat([p1["attn_w2"][e] for e in range(Ne)])             # (32, 2)
    a201 = score_mat([p1["attn_w2"][e] for e in range(Ne)]
                     + [p0["attn_w2"][e] for e in range(Ne)])          # (64, 4)

    # concat_weight pre-padded to the lane-dense output slab (y -> lanes [0:De])
    wcat = jnp.zeros(((CONV_DEPTH + 1) * DIM_EMBS, OUT_LANES), jnp.float32)
    wcat = wcat.at[:, :DIM_EMBS].set(params["concat_weight"])
    # selector placing attn at lanes [De:De+E]
    asel = jnp.zeros((Ne, OUT_LANES), jnp.float32)
    for e in range(Ne):
        asel = asel.at[e, DIM_EMBS + e].set(1.0)

    layout, total_rows = _slab_layout()
    blocks = {"wft": params["feature_trans"], "ws01": ws01, "ws1": ws1,
              "aw01": aw01, "aw1": aw1, "a201": a201, "a21": a21,
              "wcat": wcat, "asel": asel}
    wmat = jnp.zeros((total_rows, OUT_LANES), jnp.float32)
    for name, blk in blocks.items():
        off, rows = layout[name]
        assert blk.shape[0] <= rows and blk.shape[1] <= OUT_LANES
        wmat = wmat.at[off:off + blk.shape[0], :blk.shape[1]].set(blk)
    boff = layout["bias"][0]
    for i, vec in enumerate((b01, ab01, b1c, ab1)):
        wmat = wmat.at[boff + i:boff + i + 1, :vec.shape[1]].set(vec)
    return wmat


def het_attn_forward(params, adj, x):
    n = x.shape[0]
    # TODO(synk): cache the packed slab across calls in production (it only
    # depends on the parameters, not on the graph/features).
    wmat = _pack_params(params)
    layout, _ = _slab_layout()
    slab = pl.pallas_call(
        _make_fused_kernel(layout),
        out_shape=jax.ShapeDtypeStruct((n, OUT_LANES), jnp.float32),
        in_specs=[pl.BlockSpec(memory_space=pltpu.MemorySpace.VMEM)] * 3,
        out_specs=pl.BlockSpec(memory_space=pltpu.MemorySpace.VMEM),
    )(adj, x, wmat)
    y = slab[:, :DIM_EMBS]
    attn = slab[:, DIM_EMBS:DIM_EMBS + NUM_ETYPES]   # == attn.squeeze(-1).transpose(0,1)
    return y, attn


# ---------------- deterministic parameter init ----------------

def _xavier(key, shape, fan_in, fan_out, gain=1.0):
    std = gain * math.sqrt(2.0 / (fan_in + fan_out))
    return (std * jax.random.normal(key, shape)).astype(jnp.float32)


def init_params(key):
    keys = iter(jax.random.split(key, 64))
    params = {"feature_trans": _xavier(next(keys), (DIM_FEATURES, DIM_HIDDENS),
                                       DIM_FEATURES, DIM_HIDDENS)}
    convs = []
    layer_dims = [(DIM_HIDDENS, DIM_HIDDENS), (DIM_HIDDENS, DIM_EMBS)]
    for din, dout in layer_dims:
        bnd = 1.0 / math.sqrt(dout)
        convs.append({
            "w": _xavier(next(keys), (NUM_ETYPES, din, dout), din, dout),
            "wloop": _xavier(next(keys), (NUM_ETYPES, din, dout), din, dout),
            "b": jnp.zeros((NUM_ETYPES, 1, dout), jnp.float32),  # GraphConv bias: zeros
            "attn_w1": _xavier(next(keys), (NUM_ETYPES, dout, DIM_QUERY),
                               dout, DIM_QUERY),
            "attn_b1": jax.random.uniform(next(keys), (NUM_ETYPES, 1, DIM_QUERY),
                                          jnp.float32, -bnd, bnd),
            "attn_w2": _xavier(next(keys), (NUM_ETYPES, 1, DIM_QUERY),
                               DIM_QUERY, 1),
        })
    params["convs"] = convs
    cin = (CONV_DEPTH + 1) * DIM_EMBS
    params["concat_weight"] = _xavier(next(keys), (cin, DIM_EMBS), cin, DIM_EMBS)
    return params


# ---------------- pure-JAX reference (correctness check) ----------------

def _ref_hetconv(adj, h, p):
    dsts, scores = [], []
    for e in range(adj.shape[0]):
        agg = adj[e] @ h
        deg = jnp.maximum(adj[e].sum(axis=1, keepdims=True), 1.0)
        rst = (agg @ p["w"][e]) / deg + p["b"][e]
        dst = rst + h @ p["wloop"][e]
        sc = jnp.sum(jnp.tanh(dst @ p["attn_w1"][e] + p["attn_b1"][e])
                     * p["attn_w2"][e], axis=-1, keepdims=True)
        dsts.append(dst)
        scores.append(sc)
    s = jnp.stack(scores, 0)                         # (E, N, 1)
    attn = jax.nn.softmax(s, axis=0)
    out = jnp.sum(attn * jnp.stack(dsts, 0), axis=0)
    return out, attn[:, :, 0].T                      # (N, Dout), (N, E)


def _ref_forward(params, adj, x):
    h0 = jnp.tanh(x @ params["feature_trans"])
    h1, _ = _ref_hetconv(adj, h0, params["convs"][1])
    hm, _ = _ref_hetconv(adj, h0, params["convs"][0])
    h2, attn = _ref_hetconv(adj, hm, params["convs"][1])
    y = jnp.concatenate([h0, h1, h2], axis=-1) @ params["concat_weight"]
    return y, attn


if __name__ == "__main__":
    key = jax.random.PRNGKey(0)
    kp, kx, ka = jax.random.split(key, 3)
    params = init_params(kp)
    x = jax.random.normal(kx, (NUM_NODES, DIM_FEATURES), dtype=jnp.float32)
    adj = (jax.random.uniform(ka, (NUM_ETYPES, NUM_NODES, NUM_NODES)) < 0.4
           ).astype(jnp.float32)

    y, attn = het_attn_forward(params, adj, x)
    jax.block_until_ready((y, attn))

    y_ref, attn_ref = _ref_forward(params, adj, x)
    assert y.shape == (NUM_NODES, DIM_EMBS)
    assert attn.shape == (NUM_NODES, NUM_ETYPES)
    assert np.allclose(np.asarray(y), np.asarray(y_ref), rtol=1e-2, atol=1e-2)
    assert np.allclose(np.asarray(attn), np.asarray(attn_ref), rtol=1e-2, atol=1e-2)
    print("KERNEL_OK")
</pallas_src>

<mosaic_0001>
module attributes {stable_mosaic.version = 11 : i64} {
  func.func @kernel(%arg0: memref<2x8x8xf32, #tpu.memory_space<vmem>>, %arg1: memref<8x32xf32, #tpu.memory_space<vmem>>, %arg2: memref<624x128xf32, #tpu.memory_space<vmem>>, %arg3: memref<8x128xf32, #tpu.memory_space<vmem>>) attributes {dimension_semantics = [], scalar_prefetch = 0 : i64, scratch_operands = 0 : i64, tpu.core_type = #tpu.core_type<tc>} {
    %c0 = arith.constant 0 : index
    %c0_0 = arith.constant 0 : index
    %0 = vector.load %arg2[%c0, %c0_0] : memref<624x128xf32, #tpu.memory_space<vmem>>, vector<32x32xf32>
    %c32 = arith.constant 32 : index
    %c0_1 = arith.constant 0 : index
    %1 = vector.load %arg2[%c32, %c0_1] : memref<624x128xf32, #tpu.memory_space<vmem>>, vector<96x128xf32>
    %c128 = arith.constant 128 : index
    %c0_2 = arith.constant 0 : index
    %2 = vector.load %arg2[%c128, %c0_2] : memref<624x128xf32, #tpu.memory_space<vmem>>, vector<96x64xf32>
    %c224 = arith.constant 224 : index
    %c0_3 = arith.constant 0 : index
    %3 = vector.load %arg2[%c224, %c0_3] : memref<624x128xf32, #tpu.memory_space<vmem>>, vector<128x64xf32>
    %c352 = arith.constant 352 : index
    %c0_4 = arith.constant 0 : index
    %4 = vector.load %arg2[%c352, %c0_4] : memref<624x128xf32, #tpu.memory_space<vmem>>, vector<64x32xf32>
    %c416 = arith.constant 416 : index
    %c0_5 = arith.constant 0 : index
    %5 = vector.load %arg2[%c416, %c0_5] : memref<624x128xf32, #tpu.memory_space<vmem>>, vector<64x8xf32>
    %c480 = arith.constant 480 : index
    %c0_6 = arith.constant 0 : index
    %6 = vector.load %arg2[%c480, %c0_6] : memref<624x128xf32, #tpu.memory_space<vmem>>, vector<32x8xf32>
    %c512 = arith.constant 512 : index
    %c0_7 = arith.constant 0 : index
    %7 = vector.load %arg2[%c512, %c0_7] : memref<624x128xf32, #tpu.memory_space<vmem>>, vector<96x128xf32>
    %c608 = arith.constant 608 : index
    %c0_8 = arith.constant 0 : index
    %8 = vector.load %arg2[%c608, %c0_8] : memref<624x128xf32, #tpu.memory_space<vmem>>, vector<2x128xf32>
    %c616 = arith.constant 616 : index
    %c0_9 = arith.constant 0 : index
    %9 = vector.load %arg2[%c616, %c0_9] : memref<624x128xf32, #tpu.memory_space<vmem>>, vector<1x128xf32>
    %c617 = arith.constant 617 : index
    %c0_10 = arith.constant 0 : index
    %10 = vector.load %arg2[%c617, %c0_10] : memref<624x128xf32, #tpu.memory_space<vmem>>, vector<1x64xf32>
    %c618 = arith.constant 618 : index
    %c0_11 = arith.constant 0 : index
    %11 = vector.load %arg2[%c618, %c0_11] : memref<624x128xf32, #tpu.memory_space<vmem>>, vector<1x64xf32>
    %c619 = arith.constant 619 : index
    %c0_12 = arith.constant 0 : index
    %12 = vector.load %arg2[%c619, %c0_12] : memref<624x128xf32, #tpu.memory_space<vmem>>, vector<1x32xf32>
    %c0_13 = arith.constant 0 : index
    %c0_14 = arith.constant 0 : index
    %c0_15 = arith.constant 0 : index
    %13 = vector.load %arg0[%c0_13, %c0_14, %c0_15] : memref<2x8x8xf32, #tpu.memory_space<vmem>>, vector<1x8x8xf32>
    %14 = vector.shape_cast %13 : vector<1x8x8xf32> to vector<8x8xf32>
    %c1 = arith.constant 1 : index
    %c0_16 = arith.constant 0 : index
    %c0_17 = arith.constant 0 : index
    %15 = vector.load %arg0[%c1, %c0_16, %c0_17] : memref<2x8x8xf32, #tpu.memory_space<vmem>>, vector<1x8x8xf32>
    %16 = vector.shape_cast %15 : vector<1x8x8xf32> to vector<8x8xf32>
    %cst = arith.constant dense<0.000000e+00> : vector<8xf32>
    %17 = vector.multi_reduction <add>, %14, %cst [1] : vector<8x8xf32> to vector<8xf32>
    %18 = vector.shape_cast %17 : vector<8xf32> to vector<8x1xf32>
    %cst_18 = arith.constant 1.000000e+00 : f32
    %19 = vector.broadcast %cst_18 : f32 to vector<8x1xf32>
    %20 = arith.maximumf %18, %19 : vector<8x1xf32>
    %cst_19 = arith.constant 1.000000e+00 : f32
    %21 = vector.broadcast %cst_19 : f32 to vector<8x1xf32>
    %22 = arith.divf %21, %20 : vector<8x1xf32>
    %cst_20 = arith.constant dense<0.000000e+00> : vector<8xf32>
    %23 = vector.multi_reduction <add>, %16, %cst_20 [1] : vector<8x8xf32> to vector<8xf32>
    %24 = vector.shape_cast %23 : vector<8xf32> to vector<8x1xf32>
    %cst_21 = arith.constant 1.000000e+00 : f32
    %25 = vector.broadcast %cst_21 : f32 to vector<8x1xf32>
    %26 = arith.maximumf %24, %25 : vector<8x1xf32>
    %cst_22 = arith.constant 1.000000e+00 : f32
    %27 = vector.broadcast %cst_22 : f32 to vector<8x1xf32>
    %28 = arith.divf %27, %26 : vector<8x1xf32>
    %c0_23 = arith.constant 0 : index
    %c0_24 = arith.constant 0 : index
    %29 = vector.load %arg1[%c0_23, %c0_24] : memref<8x32xf32, #tpu.memory_space<vmem>>, vector<8x32xf32>
    %cst_25 = arith.constant dense<0.000000e+00> : vector<8x32xf32>
    %30 = tpu.matmul %29, %0, %cst_25 {dimension_numbers = #tpu.dot_dimension_numbers<[1], [0], [0], [1], [0, 0, 1, 1], [], []>} : vector<8x32xf32>, vector<32x32xf32>, vector<8x32xf32> -> vector<8x32xf32>
    %31 = math.tanh %30 : vector<8x32xf32>
    %cst_26 = arith.constant dense<0.000000e+00> : vector<8x32xf32>
    %32 = tpu.matmul %14, %31, %cst_26 {dimension_numbers = #tpu.dot_dimension_numbers<[1], [0], [0], [1], [0, 0, 1, 1], [], []>} : vector<8x8xf32>, vector<8x32xf32>, vector<8x32xf32> -> vector<8x32xf32>
    %33 = vector.broadcast %22 : vector<8x1xf32> to vector<8x32xf32>
    %34 = arith.mulf %32, %33 : vector<8x32xf32>
    %cst_27 = arith.constant dense<0.000000e+00> : vector<8x32xf32>
    %35 = tpu.matmul %16, %31, %cst_27 {dimension_numbers = #tpu.dot_dimension_numbers<[1], [0], [0], [1], [0, 0, 1, 1], [], []>} : vector<8x8xf32>, vector<8x32xf32>, vector<8x32xf32> -> vector<8x32xf32>
    %36 = vector.broadcast %28 : vector<8x1xf32> to vector<8x32xf32>
    %37 = arith.mulf %35, %36 : vector<8x32xf32>
    %38 = tpu.concatenate %34, %37, %31 in 1 : vector<8x32xf32>, vector<8x32xf32>, vector<8x32xf32> -> vector<8x96xf32>
    %cst_28 = arith.constant dense<0.000000e+00> : vector<8x128xf32>
    %39 = tpu.matmul %38, %1, %cst_28 {dimension_numbers = #tpu.dot_dimension_numbers<[1], [0], [0], [1], [0, 0, 1, 1], [], []>} : vector<8x96xf32>, vector<96x128xf32>, vector<8x128xf32> -> vector<8x128xf32>
    %40 = vector.broadcast %9 : vector<1x128xf32> to vector<8x128xf32>
    %41 = arith.addf %39, %40 : vector<8x128xf32>
    %cst_29 = arith.constant dense<0.000000e+00> : vector<8x64xf32>
    %42 = tpu.matmul %41, %3, %cst_29 {dimension_numbers = #tpu.dot_dimension_numbers<[1], [0], [0], [1], [0, 0, 1, 1], [], []>} : vector<8x128xf32>, vector<128x64xf32>, vector<8x64xf32> -> vector<8x64xf32>
    %43 = vector.broadcast %10 : vector<1x64xf32> to vector<8x64xf32>
    %44 = arith.addf %42, %43 : vector<8x64xf32>
    %45 = math.tanh %44 : vector<8x64xf32>
    %cst_30 = arith.constant dense<0.000000e+00> : vector<8x8xf32>
    %46 = tpu.matmul %45, %5, %cst_30 {dimension_numbers = #tpu.dot_dimension_numbers<[1], [0], [0], [1], [0, 0, 1, 1], [], []>} : vector<8x64xf32>, vector<64x8xf32>, vector<8x8xf32> -> vector<8x8xf32>
    %47 = vector.extract_strided_slice %46 {offsets = [0, 0], sizes = [8, 1], strides = [1, 1]} : vector<8x8xf32> to vector<8x1xf32>
    %48 = vector.extract_strided_slice %46 {offsets = [0, 1], sizes = [8, 1], strides = [1, 1]} : vector<8x8xf32> to vector<8x1xf32>
    %49 = arith.subf %48, %47 : vector<8x1xf32>
    %50 = math.exp %49 : vector<8x1xf32>
    %cst_31 = arith.constant 1.000000e+00 : f32
    %51 = vector.broadcast %cst_31 : f32 to vector<8x1xf32>
    %52 = arith.addf %51, %50 : vector<8x1xf32>
    %cst_32 = arith.constant 1.000000e+00 : f32
    %53 = vector.broadcast %cst_32 : f32 to vector<8x1xf32>
    %54 = arith.divf %53, %52 : vector<8x1xf32>
    %cst_33 = arith.constant 1.000000e+00 : f32
    %55 = vector.broadcast %cst_33 : f32 to vector<8x1xf32>
    %56 = arith.subf %55, %54 : vector<8x1xf32>
    %57 = vector.extract_strided_slice %46 {offsets = [0, 2], sizes = [8, 1], strides = [1, 1]} : vector<8x8xf32> to vector<8x1xf32>
    %58 = vector.extract_strided_slice %46 {offsets = [0, 3], sizes = [8, 1], strides = [1, 1]} : vector<8x8xf32> to vector<8x1xf32>
    %59 = arith.subf %58, %57 : vector<8x1xf32>
    %60 = math.exp %59 : vector<8x1xf32>
    %cst_34 = arith.constant 1.000000e+00 : f32
    %61 = vector.broadcast %cst_34 : f32 to vector<8x1xf32>
    %62 = arith.addf %61, %60 : vector<8x1xf32>
    %cst_35 = arith.constant 1.000000e+00 : f32
    %63 = vector.broadcast %cst_35 : f32 to vector<8x1xf32>
    %64 = arith.divf %63, %62 : vector<8x1xf32>
    %cst_36 = arith.constant 1.000000e+00 : f32
    %65 = vector.broadcast %cst_36 : f32 to vector<8x1xf32>
    %66 = arith.subf %65, %64 : vector<8x1xf32>
    %67 = vector.extract_strided_slice %41 {offsets = [0, 0], sizes = [8, 32], strides = [1, 1]} : vector<8x128xf32> to vector<8x32xf32>
    %68 = vector.broadcast %54 : vector<8x1xf32> to vector<8x32xf32>
    %69 = arith.mulf %68, %67 : vector<8x32xf32>
    %70 = vector.extract_strided_slice %41 {offsets = [0, 32], sizes = [8, 32], strides = [1, 1]} : vector<8x128xf32> to vector<8x32xf32>
    %71 = vector.broadcast %56 : vector<8x1xf32> to vector<8x32xf32>
    %72 = arith.mulf %71, %70 : vector<8x32xf32>
    %73 = arith.addf %69, %72 : vector<8x32xf32>
    %74 = vector.extract_strided_slice %41 {offsets = [0, 64], sizes = [8, 32], strides = [1, 1]} : vector<8x128xf32> to vector<8x32xf32>
    %75 = vector.broadcast %64 : vector<8x1xf32> to vector<8x32xf32>
    %76 = arith.mulf %75, %74 : vector<8x32xf32>
    %77 = vector.extract_strided_slice %41 {offsets = [0, 96], sizes = [8, 32], strides = [1, 1]} : vector<8x128xf32> to vector<8x32xf32>
    %78 = vector.broadcast %66 : vector<8x1xf32> to vector<8x32xf32>
    %79 = arith.mulf %78, %77 : vector<8x32xf32>
    %80 = arith.addf %76, %79 : vector<8x32xf32>
    %cst_37 = arith.constant dense<0.000000e+00> : vector<8x32xf32>
    %81 = tpu.matmul %14, %80, %cst_37 {dimension_numbers = #tpu.dot_dimension_numbers<[1], [0], [0], [1], [0, 0, 1, 1], [], []>} : vector<8x8xf32>, vector<8x32xf32>, vector<8x32xf32> -> vector<8x32xf32>
    %82 = vector.broadcast %22 : vector<8x1xf32> to vector<8x32xf32>
    %83 = arith.mulf %81, %82 : vector<8x32xf32>
    %cst_38 = arith.constant dense<0.000000e+00> : vector<8x32xf32>
    %84 = tpu.matmul %16, %80, %cst_38 {dimension_numbers = #tpu.dot_dimension_numbers<[1], [0], [0], [1], [0, 0, 1, 1], [], []>} : vector<8x8xf32>, vector<8x32xf32>, vector<8x32xf32> -> vector<8x32xf32>
    %85 = vector.broadcast %28 : vector<8x1xf32> to vector<8x32xf32>
    %86 = arith.mulf %84, %85 : vector<8x32xf32>
    %87 = tpu.concatenate %83, %86, %80 in 1 : vector<8x32xf32>, vector<8x32xf32>, vector<8x32xf32> -> vector<8x96xf32>
    %cst_39 = arith.constant dense<0.000000e+00> : vector<8x64xf32>
    %88 = tpu.matmul %87, %2, %cst_39 {dimension_numbers = #tpu.dot_dimension_numbers<[1], [0], [0], [1], [0, 0, 1, 1], [], []>} : vector<8x96xf32>, vector<96x64xf32>, vector<8x64xf32> -> vector<8x64xf32>
    %89 = vector.broadcast %11 : vector<1x64xf32> to vector<8x64xf32>
    %90 = arith.addf %88, %89 : vector<8x64xf32>
    %cst_40 = arith.constant dense<0.000000e+00> : vector<8x32xf32>
    %91 = tpu.matmul %90, %4, %cst_40 {dimension_numbers = #tpu.dot_dimension_numbers<[1], [0], [0], [1], [0, 0, 1, 1], [], []>} : vector<8x64xf32>, vector<64x32xf32>, vector<8x32xf32> -> vector<8x32xf32>
    %92 = vector.broadcast %12 : vector<1x32xf32> to vector<8x32xf32>
    %93 = arith.addf %91, %92 : vector<8x32xf32>
    %94 = math.tanh %93 : vector<8x32xf32>
    %cst_41 = arith.constant dense<0.000000e+00> : vector<8x8xf32>
    %95 = tpu.matmul %94, %6, %cst_41 {dimension_numbers = #tpu.dot_dimension_numbers<[1], [0], [0], [1], [0, 0, 1, 1], [], []>} : vector<8x32xf32>, vector<32x8xf32>, vector<8x8xf32> -> vector<8x8xf32>
    %96 = vector.extract_strided_slice %95 {offsets = [0, 0], sizes = [8, 1], strides = [1, 1]} : vector<8x8xf32> to vector<8x1xf32>
    %97 = vector.extract_strided_slice %95 {offsets = [0, 1], sizes = [8, 1], strides = [1, 1]} : vector<8x8xf32> to vector<8x1xf32>
    %98 = arith.subf %97, %96 : vector<8x1xf32>
    %99 = math.exp %98 : vector<8x1xf32>
    %cst_42 = arith.constant 1.000000e+00 : f32
    %100 = vector.broadcast %cst_42 : f32 to vector<8x1xf32>
    %101 = arith.addf %100, %99 : vector<8x1xf32>
    %cst_43 = arith.constant 1.000000e+00 : f32
    %102 = vector.broadcast %cst_43 : f32 to vector<8x1xf32>
    %103 = arith.divf %102, %101 : vector<8x1xf32>
    %cst_44 = arith.constant 1.000000e+00 : f32
    %104 = vector.broadcast %cst_44 : f32 to vector<8x1xf32>
    %105 = arith.subf %104, %103 : vector<8x1xf32>
    %106 = vector.extract_strided_slice %90 {offsets = [0, 0], sizes = [8, 32], strides = [1, 1]} : vector<8x64xf32> to vector<8x32xf32>
    %107 = vector.broadcast %103 : vector<8x1xf32> to vector<8x32xf32>
    %108 = arith.mulf %107, %106 : vector<8x32xf32>
    %109 = vector.extract_strided_slice %90 {offsets = [0, 32], sizes = [8, 32], strides = [1, 1]} : vector<8x64xf32> to vector<8x32xf32>
    %110 = vector.broadcast %105 : vector<8x1xf32> to vector<8x32xf32>
    %111 = arith.mulf %110, %109 : vector<8x32xf32>
    %112 = arith.addf %108, %111 : vector<8x32xf32>
    %113 = tpu.concatenate %103, %105 in 1 : vector<8x1xf32>, vector<8x1xf32> -> vector<8x2xf32>
    %114 = tpu.concatenate %31, %73, %112 in 1 : vector<8x32xf32>, vector<8x32xf32>, vector<8x32xf32> -> vector<8x96xf32>
    %cst_45 = arith.constant dense<0.000000e+00> : vector<8x128xf32>
    %115 = tpu.matmul %114, %7, %cst_45 {dimension_numbers = #tpu.dot_dimension_numbers<[1], [0], [0], [1], [0, 0, 1, 1], [], []>} : vector<8x96xf32>, vector<96x128xf32>, vector<8x128xf32> -> vector<8x128xf32>
    %cst_46 = arith.constant dense<0.000000e+00> : vector<8x128xf32>
    %116 = tpu.matmul %113, %8, %cst_46 {dimension_numbers = #tpu.dot_dimension_numbers<[1], [0], [0], [1], [0, 0, 1, 1], [], []>} : vector<8x2xf32>, vector<2x128xf32>, vector<8x128xf32> -> vector<8x128xf32>
    %117 = arith.addf %115, %116 : vector<8x128xf32>
    %c0_47 = arith.constant 0 : index
    %c0_48 = arith.constant 0 : index
    %118 = vector.load %arg3[%c0_47, %c0_48] : memref<8x128xf32, #tpu.memory_space<vmem>>, vector<8x128xf32>
    tpu.vector_store %arg3[%c0_47, %c0_48], %117 {strides = array<i32>} : memref<8x128xf32, #tpu.memory_space<vmem>>, vector<8x128xf32>,
    return
  }
}

</mosaic_0001>

<bundles_post_ra>
// kernel: tpu_custom_call.1
= control target key start
LH: loop header
LB: loop body
LE: loop exit
PB: predicated region body
PF: predicated region fallthrough
CT: control target
= control target key end

     0   :  { %8 = vsyncpa [#allocation3], 0  ;;  %s2040_s0 = inlined_call_operand.hbm [shape: f32[2,8,8], index: 0, kind: input, shape index: {}]   ;;  %s2041_s1 = inlined_call_operand.hbm [shape: f32[8,32], index: 1, kind: input, shape index: {}]   ;;  %s2042_s2 = inlined_call_operand.hbm [shape: f32[624,128], index: 2, kind: input, shape index: {}]   ;;  %s2043_s3 = inlined_call_operand.hbm [shape: f32[8,128], index: 3, kind: output, shape index: {}]  }
   0x1   :  { %9 = vsyncpa [#allocation6], 0 }
   0x2   :  { %10 = vsyncpa [#allocation4], 0  ;;  %s1805_s12 = smov [#allocation5]   ;;  %s1806_s14 = smov [#allocation2]  }
   0x3   :  { %s29_s13 = sshll.u32 %s1805_s12, 4  ;;  %s16_s15 = sshll.u32 %s1806_s14, 4  ;;  %s30_s13 = int_to_ptr.vmem [resolvable:$true] %s29_s13  ;;  %s1841_s15 = int_to_ptr.vmem [resolvable:$true] %s16_s15 }
   0x4   :  { %s1711_s18 = scalar_lea.hbm %s2041_s1, 128 }
   0x5   :  { %p1712_p0 = scmp.ne.s32.totalorder %s2041_s1, %s1711_s18  ;;  %p1715_p1 = scmp.lt.u32.totalorder %s1711_s18, %s2041_s1 }
   0x7   :  { %p1717_p2 = pnand %p1715_p1, %p1712_p0 }
   0x9   :  { %1720 = shalt.err (!%p1717_p2)
}
   0xa   :  { %s1721_s23 = scalar_lea.vmem %s30_s13, 128  ;;  %p1726_p4 = scmp.lt.s32.totalorder %s30_s13, %s30_s13 }
   0xb   :  { %p1722_p3 = scmp.ne.s32.totalorder %s30_s13, %s1721_s23  ;;  %p1727_p5 = scmp.lt.s32.totalorder %s1721_s23, %s1721_s23 }
   0xd   :  { %p1728_p6 = por %p1727_p5, %p1726_p4 }
   0xf   :  { %p1729_p7 = pnand %p1728_p6, %p1722_p3 }
  0x11   :  { %1732 = shalt.err (!%p1729_p7)
}
  0x12   :  { %32 = dma.hbm_to_vmem [thread:$0]  %s2041_s1, 128, %s30_s13, [#allocation6]  }
  0x13   :  { %s1733_s28 = scalar_lea.hbm %s2040_s0, 256 }
  0x14   :  { %p1734_p8 = scmp.ne.s32.totalorder %s2040_s0, %s1733_s28  ;;  %p1737_p9 = scmp.lt.u32.totalorder %s1733_s28, %s2040_s0 }
  0x16   :  { %p1739_p10 = pnand %p1737_p9, %p1734_p8 }
  0x18   :  { %1742 = shalt.err (!%p1739_p10)
}
  0x19   :  { %s1743_s6 = scalar_lea.vmem %s1841_s15, 256  ;;  %p1748_p12 = scmp.lt.s32.totalorder %s1841_s15, %s1841_s15 }
  0x1a   :  { %p1744_p11 = scmp.ne.s32.totalorder %s1841_s15, %s1743_s6  ;;  %p1749_p13 = scmp.lt.s32.totalorder %s1743_s6, %s1743_s6 }
  0x1c   :  { %p1750_p0 = por %p1749_p13, %p1748_p12 }
  0x1e   :  { %p1751_p1 = pnand %p1750_p0, %p1744_p11 }
  0x20   :  { %1754 = shalt.err (!%p1751_p1)
}
  0x21   :  { %s1807_s1 = smov 128   ;;  %s1808_s7 = smov 8  }
  0x22   :  { %22 = dma.hbm_to_vmem [thread:$0]  %s2040_s0, 256, %s1841_s15, [#allocation3], %s1807_s1, %s1807_s1, %s1808_s7  }
  0x23   :  { %s1809_s10 = smov [#allocation7]   ;;  %s1755_s14 = scalar_lea.hbm %s2042_s2, 9984 }
  0x24   :  { %s38_s11 = sshll.u32 %s1809_s10, 4  ;;  %p1756_p2 = scmp.ne.s32.totalorder %s2042_s2, %s1755_s14  ;;  %s39_s11 = int_to_ptr.vmem [resolvable:$true] %s38_s11 }
  0x25   :  { %p1759_p3 = scmp.lt.u32.totalorder %s1755_s14, %s2042_s2 }
  0x27   :  { %p1761_p4 = pnand %p1759_p3, %p1756_p2 }
  0x29   :  { %1764 = shalt.err (!%p1761_p4)
}
  0x2a   :  { %s1765_s20 = scalar_lea.vmem %s39_s11, 9984  ;;  %p1770_p6 = scmp.lt.s32.totalorder %s39_s11, %s39_s11 }
  0x2b   :  { %p1766_p5 = scmp.ne.s32.totalorder %s39_s11, %s1765_s20  ;;  %p1771_p7 = scmp.lt.s32.totalorder %s1765_s20, %s1765_s20 }
  0x2d   :  { %p1772_p8 = por %p1771_p7, %p1770_p6 }
  0x2f   :  { %p1773_p9 = pnand %p1772_p8, %p1766_p5 }
  0x31   :  { %1776 = shalt.err (!%p1773_p9)
}
  0x32   :  { %44 = dma.hbm_to_vmem [thread:$0]  %s2042_s2, 9984, %s39_s11, [#allocation6], %s1807_s1, %s1807_s1, %s1808_s7  }
  0x33   :  { %1799 = dma.done.wait [#allocation3], 256  }
  0x34   :  { %1800 = vsyncadd [#allocation3], 4294967040 }
  0x35   :  { %1801 = dma.done.wait [#allocation6], 10112  }
  0x36   :  { %1802 = vsyncadd [#allocation6], 4294957184  ;;  %v1810_v0 = vmov 0.0|0.0   ;;  %vm1811_vm0 = vmmov 0   ;;  %v1812_v1 = vmov 0.0   ;;  %v54_v2 = vld [vmem:[#allocation7] sm:$0xff] }
  0x37   :  { %1558 = vmatprep.subr.bf16.mxu0 %v1810_v0  ;;  %1365 = vmatprep.mubr.msk.f32.mxu0 %vm1811_vm0, %v1812_v1  ;;  %v55_v3 = vld [vmem:[#allocation7 + $0x8] sm:$0xff]  ;;  %v56_v4 = vld [vmem:[#allocation7 + $0x10] sm:$0xff]  ;;  %v57_v6 = vld [vmem:[#allocation7 + $0x18] sm:$0xff]  ;;  %vm152_vm1 = vcmask 261120   ;;  %vm138_vm2 = vcmask 64512   ;;  %s1813_s2 = smov 32  }
  0x38   :  { %1368 = vmatprep.subr.mxu1 %v1812_v1  ;;  %1370 = vmatprep.mubr.msk.f32.mxu1 %vm1811_vm0, %v1812_v1  ;;  %v1559_v5 = vpack.c.bf16 %v55_v3, %v54_v2  ;;  %v1562_v7 = vpack.c.bf16 %v57_v6, %v56_v4  ;;  %v151_v8 = vld [vmem:[#allocation5] sm:$0xff]  ;;  %v1895_v9 = vld [vmem:[#allocation2 + $0x8] sm:$0xff]  ;;  %v1899_v11 = vld [vmem:[#allocation2] sm:$0xff]  ;;  %s1814_s21 = smov 64   ;;  %vm384_vm3 = vcmask 523264   ;;  %vm390_vm4 = vcmask 785408  }
  0x39   :  { %v145_v10 = vsel %vm138_vm2, %v1895_v9, 0.0  ;;  %v139_v12 = vsel %vm138_vm2, %v1899_v11, 0.0  ;;  %v58_v16 = vld [vmem:[#allocation7 + $0x20] sm:$0xff]  ;;  %v59_v17 = vld [vmem:[#allocation7 + $0x28] sm:$0xff]  ;;  %v60_v18 = vld [vmem:[#allocation7 + $0x30] sm:$0xff]  ;;  %s1815_s22 = smov 1  }
  0x3a   :  { %1560 = vmatpush3.bf16.msra.mxu0 %v1559_v5  ;;  %146 = vadd.xlane.f32.xlu0 %v145_v10  ;;  %v1565_v19 = vpack.c.bf16 %v59_v17, %v58_v16  ;;  %v61_v20 = vld [vmem:[#allocation7 + $0x38] sm:$0xff]  ;;  %v62_v22 = vld [vmem:[#allocation7 + $0x40] sm:$0xff]  ;;  %v63_v23 = vld [vmem:[#allocation7 + $0x48] sm:$0xff]  ;;  %s1818_s23 = smov 96   ;;  %vm1082_vm5 = vcmask 1041408   ;;  %s1819_s24 = smov 127  }
  0x3b   :  { %1561 = vmatprep.subr.bf16.mxu0 %v1810_v0  ;;  %v1568_v21 = vpack.c.bf16 %v61_v20, %v60_v18  ;;  %v1571_v24 = vpack.c.bf16 %v63_v23, %v62_v22  ;;  %v64_v25 = vld [vmem:[#allocation7 + $0x50] sm:$0xff]  ;;  %v65_v26 = vld [vmem:[#allocation7 + $0x58] sm:$0xff]  ;;  %v66_v28 = vld [vmem:[#allocation7 + $0x60] sm:$0xff]  ;;  %vm1066_vm6 = vcmask 7168   ;;  %vm1078_vm7 = vcmask 15360   ;;  %s1820_s25 = smov [#allocation8]  }
  0x3c   :  { %v1574_v27 = vpack.c.bf16 %v65_v26, %v64_v25  ;;  %v67_v29 = vld [vmem:[#allocation7 + $0x68] sm:$0xff]  ;;  %v68_v33 = vld [vmem:[#allocation7 + $0x70] sm:$0xff]  ;;  %v69_v34 = vld [vmem:[#allocation7 + $0x78] sm:$0xff]  ;;  %s1236_s26 = sshll.u32 %s1820_s25, 4  ;;  %s1237_s26 = int_to_ptr.vmem [resolvable:$true] %s1236_s26 }
  0x3d   :  { %v1577_v30 = vpack.c.bf16 %v67_v29, %v66_v28  ;;  %v1580_v35 = vpack.c.bf16 %v69_v34, %v68_v33  ;;  %v82_v36 = vld [vmem:[#allocation7 + $0xe0] sm:$0xff]  ;;  %v83_v37 = vld [vmem:[#allocation7 + $0xe8] sm:$0xff]  ;;  %v84_v38 = vld [vmem:[#allocation7 + $0xf0] sm:$0xff]  ;;  %s1777_s27 = scalar_lea.vmem %s1237_s26, 128  ;;  %p1782_p11 = scmp.lt.s32.totalorder %s1237_s26, %s1237_s26 }
  0x3e   :  { %1563 = vmatpush3.bf16.msra.mxu0 %v1562_v7  ;;  %140 = vadd.xlane.f32.xlu0 %v139_v12  ;;  %v1583_v40 = vpack.c.bf16 %v83_v37, %v82_v36  ;;  %v85_v41 = vld [vmem:[#allocation7 + $0xf8] sm:$0xff]  ;;  %v86_v45 = vld [vmem:[#allocation7 + $0x100] sm:$0xff]  ;;  %v87_v46 = vld [vmem:[#allocation7 + $0x108] sm:$0xff]  ;;  %p1778_p10 = scmp.ne.s32.totalorder %s1237_s26, %s1777_s27  ;;  %p1783_p12 = scmp.lt.s32.totalorder %s1777_s27, %s1777_s27 }
  0x3f   :  { %1582 = vmatprep.subr.bf16.mxu0 %v1810_v0  ;;  %v1586_v44 = vpack.c.bf16 %v85_v41, %v84_v38  ;;  %v1589_v50 = vpack.c.bf16 %v87_v46, %v86_v45  ;;  %v88_v51 = vld [vmem:[#allocation7 + $0x110] sm:$0xff]  ;;  %v89_v52 = vld [vmem:[#allocation7 + $0x118] sm:$0xff]  ;;  %v90_v54 = vld [vmem:[#allocation7 + $0x120] sm:$0xff]  ;;  %v1816_v38 = vmov 3  }
  0x40   :  { %v1592_v53 = vpack.c.bf16 %v89_v52, %v88_v51  ;;  %v91_v55 = vld [vmem:[#allocation7 + $0x128] sm:$0xff]  ;;  %v92_v57 = vld [vmem:[#allocation7 + $0x130] sm:$0xff]  ;;  %v93_v58 = vld [vmem:[#allocation7 + $0x138] sm:$0xff]  ;;  %1690 = vset.pattern.permute.xlu1 %v1816_v38  ;;  %p1784_p13 = por %p1783_p12, %p1782_p11 }
  0x41   :  { %1366 = vmatmul.mubr.msk.f32.vlgmr.msra.gmra.mrb[0].mxu0 %vm152_vm1, %v151_v8  ;;  %v1595_v56 = vpack.c.bf16 %v91_v55, %v90_v54  ;;  %v1598_v59 = vpack.c.bf16 %v93_v58, %v92_v57  ;;  %v94_v60 = vld [vmem:[#allocation7 + $0x140] sm:$0xff]  ;;  %v95_v61 = vld [vmem:[#allocation7 + $0x148] sm:$0xff]  ;;  %v96_v10 = vld [vmem:[#allocation7 + $0x150] sm:$0xff] }
  0x42   :  { %1437 = vmatprep.mubr.msk.f32.mxu0 %vm1811_vm0, %v1812_v1  ;;  %1584 = vmatpush3.bf16.msra.mxu0 %v1583_v40  ;;  %v1601_v62 = vpack.c.bf16 %v95_v61, %v94_v60  ;;  %v97_v12 = vld [vmem:[#allocation7 + $0x158] sm:$0xff]  ;;  %v107_v16 = vld [vmem:[#allocation7 + $0x1a8] sm:$0xff]  ;;  %v108_v22 = vld [vmem:[#allocation7 + $0x1b0] sm:$0xff]  ;;  %p1785_p0 = pnand %p1784_p13, %p1778_p10 }
  0x43   :  { %1585 = vmatprep.subr.bf16.mxu0 %v1810_v0  ;;  %v1249_v17 = vld [vmem:[#allocation7 + $0x268] ss:$0 sm:$0xff]  ;;  %v109_v23 = vld [vmem:[#allocation7 + $0x1b8] sm:$0xff]  ;;  %v110_v25 = vld [vmem:[#allocation7 + $0x1c0] sm:$0xff] }
  0x44   :  { %v111_v26 = vld [vmem:[#allocation7 + $0x1c8] sm:$0xff]  ;;  %v112_v28 = vld [vmem:[#allocation7 + $0x1d0] sm:$0xff]  ;;  %v113_v29 = vld [vmem:[#allocation7 + $0x1d8] sm:$0xff] }
  0x45   :  { %v70_v55 = vld [vmem:[#allocation7 + $0x80] sm:$0xff]  ;;  %v72_v57 = vld [vmem:[#allocation7 + $0x90] sm:$0xff]  ;;  %v75_v60 = vld [vmem:[#allocation7 + $0xa8] sm:$0xff] }
  0x46   :  { %1587 = vmatpush3.bf16.msra.mxu0 %v1586_v44  ;;  %v115_v38 = vld [vmem:[#allocation7 + $0x1e8] sm:$0xff] }
  0x47   :  { %1588 = vmatprep.subr.bf16.mxu0 %v1810_v0 }
  0x4a   :  { %1590 = vmatpush3.bf16.msra.mxu0 %v1589_v50 }
  0x4b   :  { %1591 = vmatprep.subr.bf16.mxu0 %v1810_v0 }
  0x4e   :  { %1593 = vmatpush3.bf16.msra.mxu0 %v1592_v53 }
  0x4f   :  { %1594 = vmatprep.subr.bf16.mxu0 %v1810_v0 }
  0x52   :  { %1596 = vmatpush3.bf16.msra.mxu0 %v1595_v56  ;;  %v71_v56 = vld [vmem:[#allocation7 + $0x88] sm:$0xff] }
  0x53   :  { %1597 = vmatprep.subr.bf16.mxu0 %v1810_v0  ;;  %v1619_v58 = vpack.c.bf16 %v71_v56, %v70_v55 }
  0x56   :  { %1599 = vmatpush3.bf16.msra.mxu0 %v1598_v59  ;;  %v73_v59 = vld [vmem:[#allocation7 + $0x98] sm:$0xff] }
  0x57   :  { %1600 = vmatprep.subr.bf16.mxu0 %v1810_v0 }
  0x5a   :  { %1602 = vmatpush3.bf16.msra.mxu0 %v1601_v62  ;;  %v76_v62 = vld [vmem:[#allocation7 + $0xb0] sm:$0xff] }
  0x5b   :  { %1603 = vmatprep.subr.bf16.mxu0 %v1810_v0 }
  0xc7   :  { %v147_v31 = vpop.xlane.xlu0 %146 }
  0xc8   :  { %v148_v32 = vmax.f32 %v147_v31, 1.0  ;;  %v1251_v31 = vld [vmem:[#allocation7 + $0x269] ss:$0 sm:$0xff] }
  0xcb   :  { %v141_v63 = vpop.xlane.xlu0 %140 }
  0xcc   :  { %v142_v2 = vmax.f32 %v141_v63, 1.0  ;;  %v77_v63 = vld [vmem:[#allocation7 + $0xb8] sm:$0xff] }
 0x114   :  { %v222_v13 = vpop.f32.mrb[0].mxu0 }
 0x115   :  { %1693 = vtanh.f32 %v222_v13  ;;  %v1367_v14 = vpop.f32.mrb[1].mxu0  ;;  %v1604_v13 = vpack.c.bf16 %v97_v12, %v96_v10  ;;  %v98_v12 = vld [vmem:[#allocation7 + $0x160] sm:$0xff] }
 0x116   :  { %1695 = vrcp.f32 %v148_v32  ;;  %v106_v14 = vld [vmem:[#allocation7 + $0x1a0] sm:$0xff] }
 0x117   :  { %1697 = vrcp.f32 %v142_v2  ;;  %1605 = vmatpush3.bf16.msra.mxu0 %v1604_v13  ;;  %v1628_v2 = vpack.c.bf16 %v77_v63, %v76_v62  ;;  %v99_v13 = vld [vmem:[#allocation7 + $0x168] sm:$0xff] }
 0x118   :  { %1606 = vmatprep.subr.bf16.mxu0 %v1810_v0 }
 0x11f   :  { %v1903_v15 = vpop.eup %1693 }
 0x120   :  { %1369 = vmatpush3.msra.mxu1 %v1903_v15  ;;  %v1923_v43 = vpop.eup %1695 }
 0x121   :  { %1371 = vmatmul.mubr.msk.f32.vlgmr.msra.gmra.mrb[0].mxu1 %vm138_vm2, %v1899_v11  ;;  %1373 = vmatprep.subr.mxu1 %v1812_v1  ;;  %v1936_v3 = vpop.eup %1697 }
 0x122   :  { %1374 = vmatpush3.msra.mxu1 %v1903_v15  ;;  %1375 = vmatprep.mubr.msk.f32.mxu1 %vm1811_vm0, %v1812_v1 }
 0x123   :  { %1564 = vmatprep.subr.bf16.mxu1 %v1810_v0 }
 0x125   :  { %1376 = vmatmul.mubr.msk.f32.vlgmr.msra.gmra.mrb[2].mxu1 %vm138_vm2, %v1895_v9 }
 0x126   :  { %1402 = vmatprep.mubr.msk.f32.mxu1 %vm1811_vm0, %v1812_v1  ;;  %1566 = vmatpush3.bf16.msra.mxu1 %v1565_v19  ;;  %v1607_v19 = vpack.c.bf16 %v107_v16, %v106_v14  ;;  %v100_v14 = vld [vmem:[#allocation7 + $0x170] sm:$0xff]  ;;  %v1637_v16 = vpack.c.bf16 %v99_v13, %v98_v12 }
 0x127   :  { %1567 = vmatprep.subr.bf16.mxu1 %v1810_v0 }
 0x12a   :  { %1569 = vmatpush3.bf16.msra.mxu1 %v1568_v21 }
 0x12b   :  { %1570 = vmatprep.subr.bf16.mxu1 %v1810_v0 }
 0x12e   :  { %1572 = vmatpush3.bf16.msra.mxu1 %v1571_v24  ;;  %v1610_v24 = vpack.c.bf16 %v109_v23, %v108_v22 }
 0x12f   :  { %1573 = vmatprep.subr.bf16.mxu1 %v1810_v0 }
 0x132   :  { %1575 = vmatpush3.bf16.msra.mxu1 %v1574_v27  ;;  %v1613_v27 = vpack.c.bf16 %v111_v26, %v110_v25 }
 0x133   :  { %1576 = vmatprep.subr.bf16.mxu1 %v1810_v0 }
 0x136   :  { %1578 = vmatpush3.bf16.msra.mxu1 %v1577_v30  ;;  %v1616_v30 = vpack.c.bf16 %v113_v29, %v112_v28 }
 0x137   :  { %1579 = vmatprep.subr.bf16.mxu1 %v1810_v0 }
 0x13a   :  { %1581 = vmatpush3.bf16.msra.mxu1 %v1580_v35 }
 0x13b   :  { %1459 = vmatprep.subr.mxu1 %v1812_v1 }
 0x1f4   :  { %v296_v39 = vpop.f32.mrb[0].mxu1 }
 0x1f5   :  { %v1372_v42 = vpop.f32.mrb[1].mxu1  ;;  %v300_v5 = vmul.f32 %v1936_v3, %v296_v39  ;;  %v1817_v39 = vmov 1  }
 0x1f6   :  { %1691 = vset.pattern.permute.xlu0 %v1817_v39 }
 0x1f8   :  { %v370_v47 = vpop.f32.mrb[2].mxu1 }
 0x1f9   :  { %v374_v48 = vmul.f32 %v1923_v43, %v370_v47  ;;  %v1377_v49 = vpop.f32.mrb[3].mxu1 }
 0x1fb   :  { %376 = vrot.lane.b32.xlu1 %v374_v48, %s1813_s2 }
 0x1ff   :  { %380 = vrot.lane.b32.xlu1 %v1903_v15, %s1814_s21 }
 0x26d   :  { %v377_v4 = vpop.permute.xlu1 %376 }
 0x26e   :  { %v383_v6 = vsel %vm152_vm1, %v300_v5, %v377_v4  ;;  %v78_v4 = vld [vmem:[#allocation7 + $0xc0] sm:$0xff]  ;;  %v79_v5 = vld [vmem:[#allocation7 + $0xc8] sm:$0xff] }
 0x271   :  { %v381_v7 = vpop.permute.xlu1 %380 }
 0x272   :  { %v385_v8 = vsel %vm384_vm3, %v383_v6, %v381_v7  ;;  %v1631_v6 = vpack.c.bf16 %v79_v5, %v78_v4  ;;  %v80_v7 = vld [vmem:[#allocation7 + $0xd0] sm:$0xff]  ;;  %v119_v4 = vld [vmem:[#allocation7 + $0x208] sm:$0xff] }
 0x273   :  { %1403 = vmatmul.mubr.msk.f32.vlgmr.msra.gmra.mrb[4].mxu1 %vm390_vm4, %v385_v8  ;;  %v81_v8 = vld [vmem:[#allocation7 + $0xd8] sm:$0xff] }
 0x274   :  { %1461 = vmatprep.mubr.msk.f32.mxu1 %vm1811_vm0, %v1812_v1  ;;  %v1634_v10 = vpack.c.bf16 %v81_v8, %v80_v7  ;;  %v120_v8 = vld [vmem:[#allocation7 + $0x210] sm:$0xff] }
 0x346   :  { %v460_v18 = vpop.f32.mrb[4].mxu1 }
 0x347   :  { %v1945_v20 = vadd.f32 %v1249_v17, %v460_v18  ;;  %v1404_v21 = vpop.f32.mrb[5].mxu1  ;;  %v101_v17 = vld [vmem:[#allocation7 + $0x178] sm:$0xff] }
 0x348   :  { %v1640_v18 = vpack.c.bf16 %v101_v17, %v100_v14  ;;  %v103_v21 = vld [vmem:[#allocation7 + $0x188] sm:$0xff]  ;;  %v124_v17 = vld [vmem:[#allocation7 + $0x230] sm:$0xff] }
 0x349   :  { %1438 = vmatmul.mubr.f32.vlgmr.msra.gmra.mrb[2].mxu0 %v1945_v20  ;;  %v123_v14 = vld [vmem:[#allocation7 + $0x228] sm:$0xff] }
 0x34a   :  { %1608 = vmatpush3.bf16.msra.mxu0 %v1607_v19  ;;  %1456 = vmatprep.mubr.msk.f32.mxu0 %vm1811_vm0, %v1812_v1  ;;  %v102_v19 = vld [vmem:[#allocation7 + $0x180] sm:$0xff] }
 0x34b   :  { %1609 = vmatprep.subr.bf16.mxu0 %v1810_v0  ;;  %v1643_v22 = vpack.c.bf16 %v103_v21, %v102_v19  ;;  %v126_v21 = vld [vmem:[#allocation7 + $0x240] sm:$0xff] }
 0x34e   :  { %1611 = vmatpush3.bf16.msra.mxu0 %v1610_v24 }
 0x34f   :  { %1612 = vmatprep.subr.bf16.mxu0 %v1810_v0 }
 0x352   :  { %1614 = vmatpush3.bf16.msra.mxu0 %v1613_v27 }
 0x353   :  { %1615 = vmatprep.subr.bf16.mxu0 %v1810_v0 }
 0x356   :  { %1617 = vmatpush3.bf16.msra.mxu0 %v1616_v30 }
 0x357   :  { %1464 = vmatprep.subr.mxu0 %v1812_v1 }
 0x41c   :  { %v534_v32 = vpop.f32.mrb[2].mxu0 }
 0x41d   :  { %v535_v33 = vadd.f32 %v1251_v31, %v534_v32  ;;  %v1439_v34 = vpop.f32.mrb[3].mxu0  ;;  %v105_v32 = vld [vmem:[#allocation7 + $0x198] sm:$0xff] }
 0x41e   :  { %v1255_v34 = vld [vmem:[#allocation7 + $0x26a] ss:$0 sm:$0xff] }
 0x41f   :  { %1699 = vtanh.f32 %v535_v33 }
 0x429   :  { %v1700_v35 = vpop.eup %1699 }
 0x42a   :  { %1457 = vmatmul.mubr.msk.f32.vlgmr.msra.gmra.mrb[4].mxu0 %vm384_vm3, %v1700_v35 }
 0x42b   :  { %1466 = vmatprep.mubr.msk.f32.mxu0 %vm1811_vm0, %v1812_v1 }
 0x4fd   :  { %v608_v36 = vpop.f32.mrb[4].mxu0 }
 0x4fe   :  { %613 = vrot.lane.b32.xlu0 %v608_v36, %s1815_s22  ;;  %v1458_v37 = vpop.f32.mrb[5].mxu0 }
 0x4ff   :  { %v114_v37 = vld [vmem:[#allocation7 + $0x1e0] sm:$0xff] }
 0x570   :  { %v614_v40 = vpop.permute.xlu0 %613 }
 0x571   :  { %v616_v41 = vsub.f32 %v608_v36, %v614_v40  ;;  %v1649_v40 = vpack.c.bf16 %v115_v38, %v114_v37 }
 0x573   :  { %v617_v42 = vmul.f32 1.442695, %v616_v41  ;;  %v117_v41 = vld [vmem:[#allocation7 + $0x1f8] sm:$0xff] }
 0x575   :  { %1701 = vpow2.f32 %v617_v42 }
 0x57f   :  { %v1702_v44 = vpop.eup %1701 }
 0x580   :  { %v619_v45 = vadd.f32 1.0, %v1702_v44  ;;  %v1257_v44 = vld [vmem:[#allocation7 + $0x26b] ss:$0 sm:$0xff] }
 0x582   :  { %1703 = vrcp.f32 %v619_v45 }
 0x58c   :  { %v1958_v46 = vpop.eup %1703 }
 0x58d   :  { %v622_v47 = vsub.f32 1.0, %v1958_v46 }
 0x58f   :  { %631 = vperm.xlu0 %1691, %v622_v47   ;;  %646 = vperm.xlu1 %1690, %v622_v47  }
 0x593   :  { %641 = vperm.xlu1 %1690, %v1958_v46  }
 0x597   :  { %1692 = vset.pattern.permute.xlu1 %v1817_v39  ;;  %v116_v39 = vld [vmem:[#allocation7 + $0x1f0] sm:$0xff] }
 0x598   :  { %v1652_v42 = vpack.c.bf16 %v117_v41, %v116_v39 }
 0x60e   :  { %v647_v48 = vpop.permute.xlu1 %646 }
 0x60f   :  { %v649_v49 = vmul.f32 %v647_v48, %v1945_v20 }
 0x611   :  { %651 = vrot.lane.b32.xlu1 %v649_v49, %s1818_s23 }
 0x612   :  { %v642_v50 = vpop.permute.xlu1 %641 }
 0x613   :  { %v644_v51 = vmul.f32 %v642_v50, %v1945_v20 }
 0x683   :  { %v652_v52 = vpop.permute.xlu1 %651 }
 0x684   :  { %v1965_v53 = vadd.f32 %v652_v52, %v644_v51 }
 0x686   :  { %656 = vrot.lane.b32.xlu1 %v1965_v53, %s1814_s21 }
 0x6f8   :  { %v657_v54 = vpop.permute.xlu1 %656 }
 0x6f9   :  { %1460 = vmatpush3.msra.mxu1 %v657_v54  ;;  %1465 = vmatpush3.msra.mxu0 %v657_v54 }
 0x6fa   :  { %1462 = vmatmul.mubr.msk.f32.vlgmr.msra.gmra.mrb[6].mxu1 %vm138_vm2, %v1899_v11  ;;  %1467 = vmatmul.mubr.msk.f32.vlgmr.msra.gmra.mrb[6].mxu0 %vm138_vm2, %v1895_v9  ;;  %v1622_v11 = vpack.c.bf16 %v73_v59, %v72_v57  ;;  %v74_v9 = vld [vmem:[#allocation7 + $0xa0] sm:$0xff]  ;;  %v632_v59 = vpop.permute.xlu0 %631 }
 0x6fb   :  { %1618 = vmatprep.subr.bf16.mxu1 %v1810_v0  ;;  %1493 = vmatprep.mubr.msk.f32.mxu1 %vm1811_vm0, %v1812_v1  ;;  %v1625_v61 = vpack.c.bf16 %v75_v60, %v74_v9  ;;  %v130_v9 = vld [vmem:[#allocation7 + $0x260] sm:$0x3] }
 0x6fc   :  { %1636 = vmatprep.subr.bf16.mxu0 %v1810_v0  ;;  %1512 = vmatprep.mubr.msk.f32.mxu0 %vm1811_vm0, %v1812_v1 }
 0x6fd   :  { %1620 = vmatpush3.bf16.msra.mxu1 %v1619_v58  ;;  %1638 = vmatpush3.bf16.msra.mxu0 %v1637_v16 }
 0x6fe   :  { %1621 = vmatprep.subr.bf16.mxu1 %v1810_v0  ;;  %1639 = vmatprep.subr.bf16.mxu0 %v1810_v0 }
 0x701   :  { %1623 = vmatpush3.bf16.msra.mxu1 %v1622_v11  ;;  %1641 = vmatpush3.bf16.msra.mxu0 %v1640_v18  ;;  %v634_v11 = vmul.f32 %v632_v59, %v1945_v20  ;;  %v125_v18 = vld [vmem:[#allocation7 + $0x238] sm:$0xff] }
 0x702   :  { %1624 = vmatprep.subr.bf16.mxu1 %v1810_v0  ;;  %1642 = vmatprep.subr.bf16.mxu0 %v1810_v0  ;;  %v1664_v19 = vpack.c.bf16 %v125_v18, %v124_v17 }
 0x705   :  { %1626 = vmatpush3.bf16.msra.mxu1 %v1625_v61  ;;  %1644 = vmatpush3.bf16.msra.mxu0 %v1643_v22  ;;  %v127_v22 = vld [vmem:[#allocation7 + $0x248] sm:$0xff] }
 0x706   :  { %1627 = vmatprep.subr.bf16.mxu1 %v1810_v0  ;;  %1645 = vmatprep.subr.bf16.mxu0 %v1810_v0 }
 0x709   :  { %1629 = vmatpush3.bf16.msra.mxu1 %v1628_v2  ;;  %v118_v2 = vld [vmem:[#allocation7 + $0x200] sm:$0xff] }
 0x70a   :  { %1630 = vmatprep.subr.bf16.mxu1 %v1810_v0 }
 0x70d   :  { %1632 = vmatpush3.bf16.msra.mxu1 %v1631_v6  ;;  %v1655_v6 = vpack.c.bf16 %v119_v4, %v118_v2 }
 0x70e   :  { %1633 = vmatprep.subr.bf16.mxu1 %v1810_v0 }
 0x711   :  { %1635 = vmatpush3.bf16.msra.mxu1 %v1634_v10  ;;  %v121_v10 = vld [vmem:[#allocation7 + $0x218] sm:$0xff] }
 0x712   :  { %1526 = vmatprep.subr.mxu1 %v1812_v1  ;;  %v1658_v13 = vpack.c.bf16 %v121_v10, %v120_v8 }
 0x7cd   :  { %v725_v23 = vpop.f32.mrb[6].mxu1  ;;  %v796_v24 = vpop.f32.mrb[6].mxu0 }
 0x7ce   :  { %v800_v25 = vmul.f32 %v1923_v43, %v796_v24  ;;  %v1468_v26 = vpop.f32.mrb[7].mxu0  ;;  %v1463_v27 = vpop.f32.mrb[7].mxu1  ;;  %v729_v28 = vmul.f32 %v1936_v3, %v725_v23  ;;  %v104_v43 = vld [vmem:[#allocation7 + $0x190] sm:$0xff]  ;;  %v1667_v23 = vpack.c.bf16 %v127_v22, %v126_v21  ;;  %v129_v24 = vld [vmem:[#allocation7 + $0x258] sm:$0xff] }
 0x7cf   :  { %v1646_v33 = vpack.c.bf16 %v105_v32, %v104_v43 }
 0x7d0   :  { %802 = vrot.lane.b32.xlu1 %v800_v25, %s1813_s2 }
 0x7d1   :  { %1647 = vmatpush3.bf16.msra.mxu0 %v1646_v33 }
 0x7d2   :  { %1648 = vmatprep.subr.bf16.mxu0 %v1810_v0 }
 0x842   :  { %v803_v29 = vpop.permute.xlu1 %802 }
 0x843   :  { %v805_v30 = vsel %vm152_vm1, %v729_v28, %v803_v29 }
 0x844   :  { %v806_v31 = vsel %vm384_vm3, %v805_v30, %v1965_v53 }
 0x845   :  { %1494 = vmatmul.mubr.msk.f32.vlgmr.msra.gmra.mrb[8].mxu1 %vm390_vm4, %v806_v31 }
 0x846   :  { %1528 = vmatprep.mubr.msk.f32.mxu1 %vm1811_vm0, %v1812_v1  ;;  %1527 = vmatpush3.msk.msra.mxu1 %vm1082_vm5, %v130_v9 }
 0x847   :  { %1654 = vmatprep.subr.bf16.mxu1 %v1810_v0 }
 0x918   :  { %v880_v35 = vpop.f32.mrb[8].mxu1 }
 0x919   :  { %v1998_v3 = vadd.f32 %v1255_v34, %v880_v35  ;;  %v1495_v36 = vpop.f32.mrb[9].mxu1 }
 0x91b   :  { %1513 = vmatmul.mubr.msk.f32.vlgmr.msra.gmra.mrb[8].mxu0 %vm384_vm3, %v1998_v3 }
 0x91c   :  { %1523 = vmatprep.mubr.msk.f32.mxu0 %vm1811_vm0, %v1812_v1  ;;  %1650 = vmatpush3.bf16.msra.mxu0 %v1649_v40 }
 0x91d   :  { %1651 = vmatprep.subr.bf16.mxu0 %v1810_v0 }
 0x920   :  { %1653 = vmatpush3.bf16.msra.mxu0 %v1652_v42 }
 0x9ee   :  { %v957_v45 = vpop.f32.mrb[8].mxu0 }
 0x9ef   :  { %v958_v47 = vadd.f32 %v1257_v44, %v957_v45  ;;  %v1514_v48 = vpop.f32.mrb[9].mxu0 }
 0x9f1   :  { %1705 = vtanh.f32 %v958_v47 }
 0x9fb   :  { %v1706_v49 = vpop.eup %1705 }
 0x9fc   :  { %1524 = vmatmul.mubr.msk.f32.vlgmr.msra.gmra.mrb[10].mxu0 %vm152_vm1, %v1706_v49 }
 0xacf   :  { %v1031_v50 = vpop.f32.mrb[10].mxu0 }
 0xad0   :  { %1036 = vrot.lane.b32.xlu1 %v1031_v50, %s1815_s22  ;;  %v1525_v51 = vpop.f32.mrb[11].mxu0 }
 0xb42   :  { %v1037_v52 = vpop.permute.xlu1 %1036 }
 0xb43   :  { %v1039_v53 = vsub.f32 %v1031_v50, %v1037_v52 }
 0xb45   :  { %v1040_v54 = vmul.f32 1.442695, %v1039_v53 }
 0xb47   :  { %1707 = vpow2.f32 %v1040_v54 }
 0xb51   :  { %v1708_v55 = vpop.eup %1707 }
 0xb52   :  { %v1042_v56 = vadd.f32 1.0, %v1708_v55 }
 0xb54   :  { %1709 = vrcp.f32 %v1042_v56 }
 0xb5e   :  { %v1710_v57 = vpop.eup %1709 }
 0xb5f   :  { %1048 = vperm.xlu0 %1691, %v1710_v57   ;;  %v1045_v58 = vsub.f32 1.0, %v1710_v57 }
 0xb61   :  { %1054 = vperm.xlu1 %1692, %v1045_v58  }
 0xb65   :  { %625 = vperm.xlu1 %1692, %v1958_v46  }
 0xb69   :  { %636 = vrot.lane.b32.xlu1 %v634_v11, %s1818_s23 }
 0xb6d   :  { %1063 = vrot.lane.b32.xlu1 %v1710_v57, %s1819_s24 }
 0xbde   :  { %v1049_v26 = vpop.permute.xlu0 %1048 }
 0xbdf   :  { %v1051_v27 = vmul.f32 %v1049_v26, %v1998_v3 }
 0xbe0   :  { %v1055_v60 = vpop.permute.xlu1 %1054 }
 0xbe1   :  { %v1057_v61 = vmul.f32 %v1055_v60, %v1998_v3 }
 0xbe3   :  { %1059 = vrot.lane.b32.xlu0 %v1057_v61, %s1818_s23 }
 0xbe4   :  { %v626_v62 = vpop.permute.xlu1 %625 }
 0xbe5   :  { %v628_v63 = vmul.f32 %v626_v62, %v1945_v20  ;;  %v122_v20 = vld [vmem:[#allocation7 + $0x220] sm:$0xff] }
 0xbe6   :  { %v1661_v16 = vpack.c.bf16 %v123_v14, %v122_v20 }
 0xbe8   :  { %v637_v46 = vpop.permute.xlu1 %636 }
 0xbe9   :  { %v639_v5 = vadd.f32 %v637_v46, %v628_v63 }
 0xbeb   :  { %1069 = vrot.lane.b32.xlu0 %v639_v5, %s1813_s2 }
 0xbec   :  { %v1064_v7 = vpop.permute.xlu1 %1063 }
 0xbed   :  { %v1067_v12 = vsel %vm1066_vm6, %v1064_v7, %v1045_v58 }
 0xbee   :  { %1529 = vmatmul.mubr.msk.f32.vlgmr.msra.gmra.mrb[10].mxu1 %vm1078_vm7, %v1067_v12 }
 0xbef   :  { %1656 = vmatpush3.bf16.msra.mxu1 %v1655_v6  ;;  %1555 = vmatprep.mubr.msk.f32.mxu1 %vm1811_vm0, %v1812_v1  ;;  %v128_v1 = vld [vmem:[#allocation7 + $0x250] sm:$0xff] }
 0xbf0   :  { %1657 = vmatprep.subr.bf16.mxu1 %v1810_v0  ;;  %v1670_v25 = vpack.c.bf16 %v129_v24, %v128_v1 }
 0xbf3   :  { %1659 = vmatpush3.bf16.msra.mxu1 %v1658_v13 }
 0xbf4   :  { %1660 = vmatprep.subr.bf16.mxu1 %v1810_v0 }
 0xbf7   :  { %1662 = vmatpush3.bf16.msra.mxu1 %v1661_v16 }
 0xbf8   :  { %1663 = vmatprep.subr.bf16.mxu1 %v1810_v0 }
 0xbfb   :  { %1665 = vmatpush3.bf16.msra.mxu1 %v1664_v19 }
 0xbfc   :  { %1666 = vmatprep.subr.bf16.mxu1 %v1810_v0 }
 0xbff   :  { %1668 = vmatpush3.bf16.msra.mxu1 %v1667_v23 }
 0xc00   :  { %1669 = vmatprep.subr.bf16.mxu1 %v1810_v0 }
 0xc03   :  { %1671 = vmatpush3.bf16.msra.mxu1 %v1670_v25 }
 0xc55   :  { %v1060_v28 = vpop.permute.xlu0 %1059 }
 0xc56   :  { %v1062_v29 = vadd.f32 %v1060_v28, %v1051_v27 }
 0xc58   :  { %1073 = vrot.lane.b32.xlu1 %v1062_v29, %s1814_s21 }
 0xc5d   :  { %v1070_v30 = vpop.permute.xlu0 %1069 }
 0xc5e   :  { %v1076_v31 = vsel %vm152_vm1, %v1903_v15, %v1070_v30 }
 0xcca   :  { %v1074_v43 = vpop.permute.xlu1 %1073 }
 0xccb   :  { %v1077_v32 = vsel %vm384_vm3, %v1076_v31, %v1074_v43 }
 0xccc   :  { %1556 = vmatmul.mubr.msk.f32.vlgmr.msra.gmra.mrb[10].mxu1 %vm390_vm4, %v1077_v32 }
 0xd9f   :  { %v1225_v0 = vpop.f32.mrb[10].mxu1 }
 0xda0   :  { %1229 = vst [vmem:[#allocation8] sm:$0xff] %v1225_v0  ;;  %v1557_v33 = vpop.f32.mrb[11].mxu1 }
 0xda1   :  { %1788 = shalt.err (!%p1785_p0)
}
 0xda2   :  { %s1789_s30 = scalar_lea.hbm %s2043_s3, 128 }
 0xda3   :  { %p1790_p1 = scmp.ne.s32.totalorder %s2043_s3, %s1789_s30  ;;  %p1793_p2 = scmp.lt.u32.totalorder %s1789_s30, %s2043_s3 }
 0xda5   :  { %p1795_p3 = pnand %p1793_p2, %p1790_p1 }
 0xda7   :  { %1798 = shalt.err (!%p1795_p3)
}
 0xda8   :  { %1239 = dma.vmem_to_hbm [thread:$0]  %s1237_s26, 128, %s2043_s3, [#allocation4]  }
 0xda9   :  { %1803 = dma.done.wait [#allocation4], 128  }
 0xdaa   :  { %1804 = vsyncadd [#allocation4], 4294967168 }
 0xdab   :  { %1243 = vsyncpa [#allocation3], 1 }
 0xdac   :  { %1244 = vsyncpa [#allocation6], 1 }
 0xdad   :  { %1245 = vsyncpa [#allocation4], 1 }

</bundles_post_ra>
